<compile_context>
chip_gen: v6e
topology: v6e:2x2x1
jax: 0.10.0
libtpu: 0.0.40
codegen_flags: <defaults>
</compile_context>

<pallas_src>
import jax
import jax.numpy as jnp
from jax.experimental import pallas as pl
from jax.experimental.pallas import tpu as pltpu

# ------------------------- model hyper-params (small) -----------------------
BATCH = 8
IN_DIM = 16
HIDDEN = 32
Z_DIM = 8
NUM_BLOCKS = 2
BN_EPS = 1e-3

# "rows" packing (all rows are HIDDEN wide):
#   row 0                      : init_layer bias
#   rows 1 + 3*(blk*2+layer)   : gamma, beta, linear-bias for that BN/Linear
#   row N_ROWS-1               : fused head bias (bloc || bscale, zero-padded)
N_ROWS = 1 + NUM_BLOCKS * 2 * 3 + 1


def _batchnorm_fused(x, gamma, beta, inv_b):
    """BatchNorm1d, training mode, biased variance — single-pass statistics.

    sum(x) and sum(x*x) are independent XLU reductions (no serial mean->var
    dependency); var = E[x^2] - mean^2.
    """
    mean = jnp.sum(x, axis=0, keepdims=True) * inv_b          # (1, F)
    ex2 = jnp.sum(x * x, axis=0, keepdims=True) * inv_b       # (1, F)
    var = ex2 - mean * mean
    inv = jax.lax.rsqrt(var + BN_EPS)
    return (x - mean) * (inv * gamma) + beta


def encoder_kernel(
    x_ref,       # (B, IN_DIM)           f32
    w0_ref,      # (IN_DIM, H)           f32
    wblk_ref,    # (NB*2, H, H)          f32  stacked block linear weights
    rows_ref,    # (N_ROWS, H)           f32  all (1,H) vectors packed
    wheads_ref,  # (H, 2*Z)              f32  [wloc || wscale]
    out_ref,     # out: (B, 2*Z)         f32  [mu || logvar]
):
    x = x_ref[...]                       # already f32, no cast
    rows = rows_ref[...]                 # single load, kept resident
    wblk = wblk_ref[...]                 # single load, kept resident
    inv_b = jnp.float32(1.0 / x.shape[0])

    # init_layer
    h = jnp.dot(x, w0_ref[...], preferred_element_type=jnp.float32) + rows[0:1]

    # residual blocks (static unroll, all params already in registers/VMEM)
    for blk in range(NUM_BLOCKS):
        t = h
        for layer in range(2):
            base = 1 + 3 * (blk * 2 + layer)
            gamma = rows[base:base + 1]
            beta = rows[base + 1:base + 2]
            bias = rows[base + 2:base + 3]
            t = _batchnorm_fused(t, gamma, beta, inv_b)
            t = jnp.maximum(t, 0.0)
            t = (
                jnp.dot(t, wblk[blk * 2 + layer],
                        preferred_element_type=jnp.float32)
                + bias
            )
        h = h + t

    # fused heads: one matmul, one store of [mu || logvar]
    head_b = rows[N_ROWS - 1:N_ROWS, :2 * Z_DIM]
    out_ref[...] = (
        jnp.dot(h, wheads_ref[...], preferred_element_type=jnp.float32) + head_b
    )


def encoder_forward(x, packed):
    vmem = pl.BlockSpec(memory_space=pltpu.MemorySpace.VMEM)
    out = pl.pallas_call(
        encoder_kernel,
        out_shape=jax.ShapeDtypeStruct((x.shape[0], 2 * Z_DIM), jnp.float32),
        in_specs=[vmem] * 5,
        out_specs=vmem,
    )(x, packed["w0"], packed["wblk"], packed["rows"], packed["wheads"])
    # TODO(synk): if many independent mini-batches are processed, add a
    # leading "parallel" grid axis so v7x's two TensorCores are both used.
    mu = out[:, :Z_DIM]
    logvar = out[:, Z_DIM:]
    return mu, logvar


# ------------------------------ parameters ----------------------------------
def init_raw_params(key):
    """Deterministic init mirroring the PyTorch module.

    Linear weights stored pre-transposed as (in, out). Second linear of each
    residual block uses N(0, 0.001) weights and zero bias (reset_parameters).
    BatchNorm gamma=1, beta=0 (PyTorch defaults); BN in training mode.
    """
    ks = jax.random.split(key, 8)

    def uniform_linear(k, fan_in, shape):
        bound = 1.0 / jnp.sqrt(fan_in)
        return jax.random.uniform(k, shape, jnp.float32, -bound, bound)

    p = {}
    p["w0"] = uniform_linear(ks[0], IN_DIM, (IN_DIM, HIDDEN))
    p["b0"] = uniform_linear(ks[1], IN_DIM, (1, HIDDEN))

    w_l0 = uniform_linear(ks[2], HIDDEN, (NUM_BLOCKS, 1, HIDDEN, HIDDEN))
    b_l0 = uniform_linear(ks[3], HIDDEN, (NUM_BLOCKS, 1, 1, HIDDEN))
    w_l1 = 0.001 * jax.random.normal(ks[4], (NUM_BLOCKS, 1, HIDDEN, HIDDEN), jnp.float32)
    b_l1 = jnp.zeros((NUM_BLOCKS, 1, 1, HIDDEN), jnp.float32)
    p["wblk"] = jnp.concatenate([w_l0, w_l1], axis=1)   # (NB, 2, H, H)
    p["bblk"] = jnp.concatenate([b_l0, b_l1], axis=1)   # (NB, 2, 1, H)

    p["gamma"] = jnp.ones((NUM_BLOCKS, 2, 1, HIDDEN), jnp.float32)
    p["beta"] = jnp.zeros((NUM_BLOCKS, 2, 1, HIDDEN), jnp.float32)

    p["wloc"] = uniform_linear(ks[5], HIDDEN, (HIDDEN, Z_DIM))
    p["bloc"] = uniform_linear(ks[6], HIDDEN, (1, Z_DIM))
    p["wscale"] = uniform_linear(ks[7], HIDDEN, (HIDDEN, Z_DIM))
    p["bscale"] = jnp.zeros((1, Z_DIM), jnp.float32)
    return p


def pack_params(p):
    """Pack raw params into the 4 dense kernel operands."""
    # rows: (N_ROWS, H)
    rows = [p["b0"]]
    for blk in range(NUM_BLOCKS):
        for layer in range(2):
            rows.append(p["gamma"][blk, layer])
            rows.append(p["beta"][blk, layer])
            rows.append(p["bblk"][blk, layer])
    head_b = jnp.concatenate([p["bloc"], p["bscale"]], axis=1)          # (1, 2Z)
    head_b = jnp.pad(head_b, ((0, 0), (0, HIDDEN - 2 * Z_DIM)))         # (1, H)
    rows.append(head_b)
    rows = jnp.concatenate(rows, axis=0)                                # (N_ROWS, H)

    wblk = p["wblk"].reshape(NUM_BLOCKS * 2, HIDDEN, HIDDEN)
    wheads = jnp.concatenate([p["wloc"], p["wscale"]], axis=1)          # (H, 2Z)
    return {"w0": p["w0"], "wblk": wblk, "rows": rows, "wheads": wheads}


# ------------------------------ reference -----------------------------------
def _batchnorm_ref(x, gamma, beta):
    mean = jnp.mean(x, axis=0, keepdims=True)
    var = jnp.mean((x - mean) ** 2, axis=0, keepdims=True)  # biased
    return (x - mean) * jax.lax.rsqrt(var + BN_EPS) * gamma + beta


def encoder_reference(x, p):
    h = x @ p["w0"] + p["b0"]
    for blk in range(NUM_BLOCKS):
        t = h
        for layer in range(2):
            t = _batchnorm_ref(t, p["gamma"][blk, layer], p["beta"][blk, layer])
            t = jnp.maximum(t, 0.0)
            t = t @ p["wblk"][blk, layer] + p["bblk"][blk, layer]
        h = h + t
    mu = h @ p["wloc"] + p["bloc"]
    logvar = h @ p["wscale"] + p["bscale"]
    return mu, logvar


if __name__ == "__main__":
    key = jax.random.PRNGKey(0)
    k_x, k_p = jax.random.split(key)
    x = jax.random.normal(k_x, (BATCH, IN_DIM), jnp.float32)
    raw = init_raw_params(k_p)
    packed = pack_params(raw)

    mu, logvar = encoder_forward(x, packed)
    jax.block_until_ready((mu, logvar))

    mu_ref, logvar_ref = encoder_reference(x, raw)
    assert mu.shape == (BATCH, Z_DIM) and logvar.shape == (BATCH, Z_DIM)
    assert jnp.allclose(mu, mu_ref, atol=1e-4, rtol=1e-4)
    assert jnp.allclose(logvar, logvar_ref, atol=1e-4, rtol=1e-4)

    print("KERNEL_OK")
</pallas_src>

<mosaic_0001>
module attributes {stable_mosaic.version = 11 : i64} {
  func.func @encoder_kernel(%arg0: memref<8x16xf32, #tpu.memory_space<vmem>>, %arg1: memref<16x32xf32, #tpu.memory_space<vmem>>, %arg2: memref<4x32x32xf32, #tpu.memory_space<vmem>>, %arg3: memref<14x32xf32, #tpu.memory_space<vmem>>, %arg4: memref<32x16xf32, #tpu.memory_space<vmem>>, %arg5: memref<8x16xf32, #tpu.memory_space<vmem>>) attributes {dimension_semantics = [], scalar_prefetch = 0 : i64, scratch_operands = 0 : i64, tpu.core_type = #tpu.core_type<tc>} {
    %c0 = arith.constant 0 : index
    %c0_0 = arith.constant 0 : index
    %0 = vector.load %arg0[%c0, %c0_0] : memref<8x16xf32, #tpu.memory_space<vmem>>, vector<8x16xf32>
    %c0_1 = arith.constant 0 : index
    %c0_2 = arith.constant 0 : index
    %1 = vector.load %arg3[%c0_1, %c0_2] : memref<14x32xf32, #tpu.memory_space<vmem>>, vector<14x32xf32>
    %c0_3 = arith.constant 0 : index
    %c0_4 = arith.constant 0 : index
    %c0_5 = arith.constant 0 : index
    %2 = vector.load %arg2[%c0_3, %c0_4, %c0_5] : memref<4x32x32xf32, #tpu.memory_space<vmem>>, vector<4x32x32xf32>
    %c0_6 = arith.constant 0 : index
    %c0_7 = arith.constant 0 : index
    %3 = vector.load %arg1[%c0_6, %c0_7] : memref<16x32xf32, #tpu.memory_space<vmem>>, vector<16x32xf32>
    %cst = arith.constant dense<0.000000e+00> : vector<8x32xf32>
    %4 = tpu.matmul %0, %3, %cst {dimension_numbers = #tpu.dot_dimension_numbers<[1], [0], [0], [1], [0, 0, 1, 1], [], []>} : vector<8x16xf32>, vector<16x32xf32>, vector<8x32xf32> -> vector<8x32xf32>
    %5 = vector.extract_strided_slice %1 {offsets = [0, 0], sizes = [1, 32], strides = [1, 1]} : vector<14x32xf32> to vector<1x32xf32>
    %6 = vector.broadcast %5 : vector<1x32xf32> to vector<8x32xf32>
    %7 = arith.addf %4, %6 : vector<8x32xf32>
    %8 = vector.extract_strided_slice %1 {offsets = [1, 0], sizes = [1, 32], strides = [1, 1]} : vector<14x32xf32> to vector<1x32xf32>
    %9 = vector.extract_strided_slice %1 {offsets = [2, 0], sizes = [1, 32], strides = [1, 1]} : vector<14x32xf32> to vector<1x32xf32>
    %10 = vector.extract_strided_slice %1 {offsets = [3, 0], sizes = [1, 32], strides = [1, 1]} : vector<14x32xf32> to vector<1x32xf32>
    %cst_8 = arith.constant dense<0.000000e+00> : vector<32xf32>
    %11 = vector.multi_reduction <add>, %7, %cst_8 [0] : vector<8x32xf32> to vector<32xf32>
    %12 = vector.shape_cast %11 : vector<32xf32> to vector<1x32xf32>
    %cst_9 = arith.constant 1.250000e-01 : f32
    %13 = vector.broadcast %cst_9 : f32 to vector<1x32xf32>
    %14 = arith.mulf %12, %13 : vector<1x32xf32>
    %15 = arith.mulf %7, %7 : vector<8x32xf32>
    %cst_10 = arith.constant dense<0.000000e+00> : vector<32xf32>
    %16 = vector.multi_reduction <add>, %15, %cst_10 [0] : vector<8x32xf32> to vector<32xf32>
    %17 = vector.shape_cast %16 : vector<32xf32> to vector<1x32xf32>
    %cst_11 = arith.constant 1.250000e-01 : f32
    %18 = vector.broadcast %cst_11 : f32 to vector<1x32xf32>
    %19 = arith.mulf %17, %18 : vector<1x32xf32>
    %20 = arith.mulf %14, %14 : vector<1x32xf32>
    %21 = arith.subf %19, %20 : vector<1x32xf32>
    %cst_12 = arith.constant 1.000000e-03 : f32
    %22 = vector.broadcast %cst_12 : f32 to vector<1x32xf32>
    %23 = arith.addf %21, %22 : vector<1x32xf32>
    %24 = math.rsqrt %23 : vector<1x32xf32>
    %25 = vector.broadcast %14 : vector<1x32xf32> to vector<8x32xf32>
    %26 = arith.subf %7, %25 : vector<8x32xf32>
    %27 = arith.mulf %24, %8 : vector<1x32xf32>
    %28 = vector.broadcast %27 : vector<1x32xf32> to vector<8x32xf32>
    %29 = arith.mulf %26, %28 : vector<8x32xf32>
    %30 = vector.broadcast %9 : vector<1x32xf32> to vector<8x32xf32>
    %31 = arith.addf %29, %30 : vector<8x32xf32>
    %cst_13 = arith.constant 0.000000e+00 : f32
    %32 = vector.broadcast %cst_13 : f32 to vector<8x32xf32>
    %33 = arith.maximumf %31, %32 : vector<8x32xf32>
    %34 = vector.extract_strided_slice %2 {offsets = [0, 0, 0], sizes = [1, 32, 32], strides = [1, 1, 1]} : vector<4x32x32xf32> to vector<1x32x32xf32>
    %35 = vector.shape_cast %34 : vector<1x32x32xf32> to vector<32x32xf32>
    %cst_14 = arith.constant dense<0.000000e+00> : vector<8x32xf32>
    %36 = tpu.matmul %33, %35, %cst_14 {dimension_numbers = #tpu.dot_dimension_numbers<[1], [0], [0], [1], [0, 0, 1, 1], [], []>} : vector<8x32xf32>, vector<32x32xf32>, vector<8x32xf32> -> vector<8x32xf32>
    %37 = vector.broadcast %10 : vector<1x32xf32> to vector<8x32xf32>
    %38 = arith.addf %36, %37 : vector<8x32xf32>
    %39 = vector.extract_strided_slice %1 {offsets = [4, 0], sizes = [1, 32], strides = [1, 1]} : vector<14x32xf32> to vector<1x32xf32>
    %40 = vector.extract_strided_slice %1 {offsets = [5, 0], sizes = [1, 32], strides = [1, 1]} : vector<14x32xf32> to vector<1x32xf32>
    %41 = vector.extract_strided_slice %1 {offsets = [6, 0], sizes = [1, 32], strides = [1, 1]} : vector<14x32xf32> to vector<1x32xf32>
    %cst_15 = arith.constant dense<0.000000e+00> : vector<32xf32>
    %42 = vector.multi_reduction <add>, %38, %cst_15 [0] : vector<8x32xf32> to vector<32xf32>
    %43 = vector.shape_cast %42 : vector<32xf32> to vector<1x32xf32>
    %cst_16 = arith.constant 1.250000e-01 : f32
    %44 = vector.broadcast %cst_16 : f32 to vector<1x32xf32>
    %45 = arith.mulf %43, %44 : vector<1x32xf32>
    %46 = arith.mulf %38, %38 : vector<8x32xf32>
    %cst_17 = arith.constant dense<0.000000e+00> : vector<32xf32>
    %47 = vector.multi_reduction <add>, %46, %cst_17 [0] : vector<8x32xf32> to vector<32xf32>
    %48 = vector.shape_cast %47 : vector<32xf32> to vector<1x32xf32>
    %cst_18 = arith.constant 1.250000e-01 : f32
    %49 = vector.broadcast %cst_18 : f32 to vector<1x32xf32>
    %50 = arith.mulf %48, %49 : vector<1x32xf32>
    %51 = arith.mulf %45, %45 : vector<1x32xf32>
    %52 = arith.subf %50, %51 : vector<1x32xf32>
    %cst_19 = arith.constant 1.000000e-03 : f32
    %53 = vector.broadcast %cst_19 : f32 to vector<1x32xf32>
    %54 = arith.addf %52, %53 : vector<1x32xf32>
    %55 = math.rsqrt %54 : vector<1x32xf32>
    %56 = vector.broadcast %45 : vector<1x32xf32> to vector<8x32xf32>
    %57 = arith.subf %38, %56 : vector<8x32xf32>
    %58 = arith.mulf %55, %39 : vector<1x32xf32>
    %59 = vector.broadcast %58 : vector<1x32xf32> to vector<8x32xf32>
    %60 = arith.mulf %57, %59 : vector<8x32xf32>
    %61 = vector.broadcast %40 : vector<1x32xf32> to vector<8x32xf32>
    %62 = arith.addf %60, %61 : vector<8x32xf32>
    %cst_20 = arith.constant 0.000000e+00 : f32
    %63 = vector.broadcast %cst_20 : f32 to vector<8x32xf32>
    %64 = arith.maximumf %62, %63 : vector<8x32xf32>
    %65 = vector.extract_strided_slice %2 {offsets = [1, 0, 0], sizes = [1, 32, 32], strides = [1, 1, 1]} : vector<4x32x32xf32> to vector<1x32x32xf32>
    %66 = vector.shape_cast %65 : vector<1x32x32xf32> to vector<32x32xf32>
    %cst_21 = arith.constant dense<0.000000e+00> : vector<8x32xf32>
    %67 = tpu.matmul %64, %66, %cst_21 {dimension_numbers = #tpu.dot_dimension_numbers<[1], [0], [0], [1], [0, 0, 1, 1], [], []>} : vector<8x32xf32>, vector<32x32xf32>, vector<8x32xf32> -> vector<8x32xf32>
    %68 = vector.broadcast %41 : vector<1x32xf32> to vector<8x32xf32>
    %69 = arith.addf %67, %68 : vector<8x32xf32>
    %70 = arith.addf %7, %69 : vector<8x32xf32>
    %71 = vector.extract_strided_slice %1 {offsets = [7, 0], sizes = [1, 32], strides = [1, 1]} : vector<14x32xf32> to vector<1x32xf32>
    %72 = vector.extract_strided_slice %1 {offsets = [8, 0], sizes = [1, 32], strides = [1, 1]} : vector<14x32xf32> to vector<1x32xf32>
    %73 = vector.extract_strided_slice %1 {offsets = [9, 0], sizes = [1, 32], strides = [1, 1]} : vector<14x32xf32> to vector<1x32xf32>
    %cst_22 = arith.constant dense<0.000000e+00> : vector<32xf32>
    %74 = vector.multi_reduction <add>, %70, %cst_22 [0] : vector<8x32xf32> to vector<32xf32>
    %75 = vector.shape_cast %74 : vector<32xf32> to vector<1x32xf32>
    %cst_23 = arith.constant 1.250000e-01 : f32
    %76 = vector.broadcast %cst_23 : f32 to vector<1x32xf32>
    %77 = arith.mulf %75, %76 : vector<1x32xf32>
    %78 = arith.mulf %70, %70 : vector<8x32xf32>
    %cst_24 = arith.constant dense<0.000000e+00> : vector<32xf32>
    %79 = vector.multi_reduction <add>, %78, %cst_24 [0] : vector<8x32xf32> to vector<32xf32>
    %80 = vector.shape_cast %79 : vector<32xf32> to vector<1x32xf32>
    %cst_25 = arith.constant 1.250000e-01 : f32
    %81 = vector.broadcast %cst_25 : f32 to vector<1x32xf32>
    %82 = arith.mulf %80, %81 : vector<1x32xf32>
    %83 = arith.mulf %77, %77 : vector<1x32xf32>
    %84 = arith.subf %82, %83 : vector<1x32xf32>
    %cst_26 = arith.constant 1.000000e-03 : f32
    %85 = vector.broadcast %cst_26 : f32 to vector<1x32xf32>
    %86 = arith.addf %84, %85 : vector<1x32xf32>
    %87 = math.rsqrt %86 : vector<1x32xf32>
    %88 = vector.broadcast %77 : vector<1x32xf32> to vector<8x32xf32>
    %89 = arith.subf %70, %88 : vector<8x32xf32>
    %90 = arith.mulf %87, %71 : vector<1x32xf32>
    %91 = vector.broadcast %90 : vector<1x32xf32> to vector<8x32xf32>
    %92 = arith.mulf %89, %91 : vector<8x32xf32>
    %93 = vector.broadcast %72 : vector<1x32xf32> to vector<8x32xf32>
    %94 = arith.addf %92, %93 : vector<8x32xf32>
    %cst_27 = arith.constant 0.000000e+00 : f32
    %95 = vector.broadcast %cst_27 : f32 to vector<8x32xf32>
    %96 = arith.maximumf %94, %95 : vector<8x32xf32>
    %97 = vector.extract_strided_slice %2 {offsets = [2, 0, 0], sizes = [1, 32, 32], strides = [1, 1, 1]} : vector<4x32x32xf32> to vector<1x32x32xf32>
    %98 = vector.shape_cast %97 : vector<1x32x32xf32> to vector<32x32xf32>
    %cst_28 = arith.constant dense<0.000000e+00> : vector<8x32xf32>
    %99 = tpu.matmul %96, %98, %cst_28 {dimension_numbers = #tpu.dot_dimension_numbers<[1], [0], [0], [1], [0, 0, 1, 1], [], []>} : vector<8x32xf32>, vector<32x32xf32>, vector<8x32xf32> -> vector<8x32xf32>
    %100 = vector.broadcast %73 : vector<1x32xf32> to vector<8x32xf32>
    %101 = arith.addf %99, %100 : vector<8x32xf32>
    %102 = vector.extract_strided_slice %1 {offsets = [10, 0], sizes = [1, 32], strides = [1, 1]} : vector<14x32xf32> to vector<1x32xf32>
    %103 = vector.extract_strided_slice %1 {offsets = [11, 0], sizes = [1, 32], strides = [1, 1]} : vector<14x32xf32> to vector<1x32xf32>
    %104 = vector.extract_strided_slice %1 {offsets = [12, 0], sizes = [1, 32], strides = [1, 1]} : vector<14x32xf32> to vector<1x32xf32>
    %cst_29 = arith.constant dense<0.000000e+00> : vector<32xf32>
    %105 = vector.multi_reduction <add>, %101, %cst_29 [0] : vector<8x32xf32> to vector<32xf32>
    %106 = vector.shape_cast %105 : vector<32xf32> to vector<1x32xf32>
    %cst_30 = arith.constant 1.250000e-01 : f32
    %107 = vector.broadcast %cst_30 : f32 to vector<1x32xf32>
    %108 = arith.mulf %106, %107 : vector<1x32xf32>
    %109 = arith.mulf %101, %101 : vector<8x32xf32>
    %cst_31 = arith.constant dense<0.000000e+00> : vector<32xf32>
    %110 = vector.multi_reduction <add>, %109, %cst_31 [0] : vector<8x32xf32> to vector<32xf32>
    %111 = vector.shape_cast %110 : vector<32xf32> to vector<1x32xf32>
    %cst_32 = arith.constant 1.250000e-01 : f32
    %112 = vector.broadcast %cst_32 : f32 to vector<1x32xf32>
    %113 = arith.mulf %111, %112 : vector<1x32xf32>
    %114 = arith.mulf %108, %108 : vector<1x32xf32>
    %115 = arith.subf %113, %114 : vector<1x32xf32>
    %cst_33 = arith.constant 1.000000e-03 : f32
    %116 = vector.broadcast %cst_33 : f32 to vector<1x32xf32>
    %117 = arith.addf %115, %116 : vector<1x32xf32>
    %118 = math.rsqrt %117 : vector<1x32xf32>
    %119 = vector.broadcast %108 : vector<1x32xf32> to vector<8x32xf32>
    %120 = arith.subf %101, %119 : vector<8x32xf32>
    %121 = arith.mulf %118, %102 : vector<1x32xf32>
    %122 = vector.broadcast %121 : vector<1x32xf32> to vector<8x32xf32>
    %123 = arith.mulf %120, %122 : vector<8x32xf32>
    %124 = vector.broadcast %103 : vector<1x32xf32> to vector<8x32xf32>
    %125 = arith.addf %123, %124 : vector<8x32xf32>
    %cst_34 = arith.constant 0.000000e+00 : f32
    %126 = vector.broadcast %cst_34 : f32 to vector<8x32xf32>
    %127 = arith.maximumf %125, %126 : vector<8x32xf32>
    %128 = vector.extract_strided_slice %2 {offsets = [3, 0, 0], sizes = [1, 32, 32], strides = [1, 1, 1]} : vector<4x32x32xf32> to vector<1x32x32xf32>
    %129 = vector.shape_cast %128 : vector<1x32x32xf32> to vector<32x32xf32>
    %cst_35 = arith.constant dense<0.000000e+00> : vector<8x32xf32>
    %130 = tpu.matmul %127, %129, %cst_35 {dimension_numbers = #tpu.dot_dimension_numbers<[1], [0], [0], [1], [0, 0, 1, 1], [], []>} : vector<8x32xf32>, vector<32x32xf32>, vector<8x32xf32> -> vector<8x32xf32>
    %131 = vector.broadcast %104 : vector<1x32xf32> to vector<8x32xf32>
    %132 = arith.addf %130, %131 : vector<8x32xf32>
    %133 = arith.addf %70, %132 : vector<8x32xf32>
    %134 = vector.extract_strided_slice %1 {offsets = [13, 0], sizes = [1, 16], strides = [1, 1]} : vector<14x32xf32> to vector<1x16xf32>
    %c0_36 = arith.constant 0 : index
    %c0_37 = arith.constant 0 : index
    %135 = vector.load %arg4[%c0_36, %c0_37] : memref<32x16xf32, #tpu.memory_space<vmem>>, vector<32x16xf32>
    %cst_38 = arith.constant dense<0.000000e+00> : vector<8x16xf32>
    %136 = tpu.matmul %133, %135, %cst_38 {dimension_numbers = #tpu.dot_dimension_numbers<[1], [0], [0], [1], [0, 0, 1, 1], [], []>} : vector<8x32xf32>, vector<32x16xf32>, vector<8x16xf32> -> vector<8x16xf32>
    %137 = vector.broadcast %134 : vector<1x16xf32> to vector<8x16xf32>
    %138 = arith.addf %136, %137 : vector<8x16xf32>
    %c0_39 = arith.constant 0 : index
    %c0_40 = arith.constant 0 : index
    %139 = vector.load %arg5[%c0_39, %c0_40] : memref<8x16xf32, #tpu.memory_space<vmem>>, vector<8x16xf32>
    tpu.vector_store %arg5[%c0_39, %c0_40], %138 {strides = array<i32>} : memref<8x16xf32, #tpu.memory_space<vmem>>, vector<8x16xf32>,
    return
  }
}

</mosaic_0001>

<bundles_post_ra>
// kernel: tpu_custom_call.1
= control target key start
LH: loop header
LB: loop body
LE: loop exit
PB: predicated region body
PF: predicated region fallthrough
CT: control target
= control target key end

     0   :  { %10 = vsyncpa [#allocation3], 0  ;;  %s1016_s0 = inlined_call_operand.vmem [shape: f32[8,16], index: 0, kind: input, shape index: {}]   ;;  %s1017_s1 = inlined_call_operand.vmem [shape: f32[16,32], index: 1, kind: input, shape index: {}]   ;;  %s1018_s2 = inlined_call_operand.hbm [shape: f32[4,32,32], index: 2, kind: input, shape index: {}]   ;;  %s1019_s3 = inlined_call_operand.vmem [shape: f32[14,32], index: 3, kind: input, shape index: {}]   ;;  %s1020_s4 = inlined_call_operand.vmem [shape: f32[32,16], index: 4, kind: input, shape index: {}]   ;;  %s1021_s5 = inlined_call_operand.hbm [shape: f32[8,16], index: 5, kind: output, shape index: {}]  }
   0x1   :  { %11 = vsyncpa [#allocation4], 0  ;;  %s832_s18 = smov [#allocation2]  }
   0x2   :  { %s21_s19 = sshll.u32 %s832_s18, 4  ;;  %s22_s19 = int_to_ptr.vmem [resolvable:$true] %s21_s19 }
   0x3   :  { %s796_s20 = scalar_lea.vmem %s22_s19, 2048  ;;  %p801_p1 = scmp.lt.s32.totalorder %s22_s19, %s22_s19 }
   0x4   :  { %p797_p0 = scmp.ne.s32.totalorder %s22_s19, %s796_s20  ;;  %p802_p2 = scmp.lt.s32.totalorder %s796_s20, %s796_s20 }
   0x6   :  { %p803_p3 = por %p802_p2, %p801_p1 }
   0x8   :  { %p804_p4 = pnand %p803_p3, %p797_p0 }
   0xa   :  { %807 = shalt.err (!%p804_p4)
}
   0xb   :  { %s833_s21 = smov 128   ;;  %s834_s22 = smov 8  }
   0xc   :  { %27 = dma.hbm_to_vmem [thread:$0]  %s1018_s2, 2048, %s22_s19, [#allocation3], %s833_s21, %s833_s21, %s834_s22  }
   0xd   :  { %828 = dma.done.wait [#allocation3], 2048  }
   0xe   :  { %829 = vsyncadd [#allocation3], 4294965248  ;;  %v835_v0 = vmov 0.0   ;;  %vm836_vm0 = vmmov 0   ;;  %v55_v1 = vld [vmem:[%s1017_s1 + $0x8] sm:$0xff]  ;;  %v54_v2 = vld [vmem:[%s1017_s1] sm:$0xff]  ;;  %v56_v8 = vlaneseq }
   0xf   :  { %712 = vmatprep.subr.mxu0 %v835_v0  ;;  %716 = vmatprep.mubr.msk.f32.mxu0 %vm836_vm0, %v835_v0  ;;  %v35_v3 = vld [vmem:[%s1016_s0] sm:$0xff]  ;;  %vm60_vm1 = vcmask 130048   ;;  %v41_v4 = vld [vmem:[#allocation2 + $0x18] sm:$0xff]  ;;  %v40_v5 = vld [vmem:[#allocation2 + $0x10] sm:$0xff]  ;;  %vm134_vm2 = vcmask 261120   ;;  %s837_s14 = smov [#allocation5]  }
  0x10   :  { %719 = vmatprep.subr.mxu1 %v835_v0  ;;  %727 = vmatprep.mubr.msk.f32.mxu1 %vm836_vm0, %v835_v0  ;;  %v39_v6 = vld [vmem:[#allocation2 + $0x8] sm:$0xff]  ;;  %v38_v7 = vld [vmem:[#allocation2] sm:$0xff]  ;;  %v895_v9 = vshrl.u32 %v56_v8, 7  ;;  %v45_v46 = vld [vmem:[#allocation2 + $0x38] sm:$0xff]  ;;  %s669_s15 = sshll.u32 %s837_s14, 4  ;;  %s670_s15 = int_to_ptr.vmem [resolvable:$true] %s669_s15 }
  0x11   :  { %713 = vmatpush3.msra.mxu0 %v55_v1  ;;  %720 = vmatpush3.msra.mxu1 %v41_v4  ;;  %v901_v11 = vld [vmem:[%s1019_s3] sm:$0xff]  ;;  %v44_v47 = vld [vmem:[#allocation2 + $0x30] sm:$0xff]  ;;  %v43_v48 = vld [vmem:[#allocation2 + $0x28] sm:$0xff]  ;;  %p813_p6 = scmp.lt.s32.totalorder %s670_s15, %s670_s15 }
  0x12   :  { %714 = vmatprep.subr.mxu0 %v835_v0  ;;  %721 = vmatprep.subr.mxu1 %v835_v0  ;;  %v58_v10 = vsub.s32 0, %v895_v9  ;;  %v160_v36 = vsub.s32 1, %v895_v9  ;;  %v165_v37 = vsub.s32 2, %v895_v9  ;;  %v42_v49 = vld [vmem:[#allocation2 + $0x20] sm:$0xff]  ;;  %v171_v50 = vsub.s32 3, %v895_v9 }
  0x13   :  { %715 = vmatpush3.msra.mxu0 %v54_v2  ;;  %722 = vmatpush3.msra.mxu1 %v40_v5 }
  0x14   :  { %717 = vmatmul.mubr.msk.f32.vlgmr.msra.gmra.mxu0 %vm60_vm1, %v35_v3  ;;  %730 = vmatprep.subr.mxu0 %v835_v0  ;;  %v59_v12 = vrot.slane %v901_v11, %v58_v10  ;;  %v166_v42 = vrot.slane %v901_v11, %v165_v37  ;;  %v172_v51 = vrot.slane %v901_v11, %v171_v50 }
  0x15   :  { %738 = vmatprep.mubr.msk.f32.mxu0 %vm836_vm0, %v835_v0  ;;  %723 = vmatprep.subr.mxu1 %v835_v0 }
  0x16   :  { %724 = vmatpush3.msra.mxu1 %v39_v6  ;;  %731 = vmatpush3.msra.mxu0 %v45_v46 }
  0x17   :  { %725 = vmatprep.subr.mxu1 %v835_v0  ;;  %732 = vmatprep.subr.mxu0 %v835_v0 }
  0x18   :  { %726 = vmatpush3.msra.mxu1 %v38_v7  ;;  %733 = vmatpush3.msra.mxu0 %v44_v47 }
  0x19   :  { %741 = vmatprep.subr.mxu1 %v835_v0  ;;  %734 = vmatprep.subr.mxu0 %v835_v0 }
  0x1a   :  { %735 = vmatpush3.msra.mxu0 %v43_v48 }
  0x1b   :  { %736 = vmatprep.subr.mxu0 %v835_v0 }
  0x1c   :  { %737 = vmatpush3.msra.mxu0 %v42_v49 }
  0x1d   :  { %752 = vmatprep.subr.mxu0 %v835_v0 }
  0xd4   :  { %v130_v13 = vpop.f32.mrf.mxu0 }
  0xd5   :  { %v906_v14 = vadd.f32 %v130_v13, %v59_v12 }
  0xd6   :  { %v718_v15 = vpop.f32.mrf.mxu0 }
  0xd7   :  { %v135_v16 = vsel %vm134_vm2, %v906_v14, 0.0  ;;  %v143_v17 = vmul.f32 %v906_v14, %v906_v14 }
  0xd8   :  { %v136_v18 = vrot.slane %v135_v16, 4 }
  0xd9   :  { %v144_v19 = vsel %vm134_vm2, %v143_v17, 0.0  ;;  %v276_v17 = vsub.s32 5, %v895_v9 }
  0xda   :  { %v137_v20 = vadd.f32 %v136_v18, %v135_v16  ;;  %v145_v21 = vrot.slane %v144_v19, 4  ;;  %v271_v16 = vsub.s32 4, %v895_v9 }
  0xdc   :  { %v138_v22 = vrot.slane %v137_v20, 2  ;;  %v146_v23 = vadd.f32 %v145_v21, %v144_v19 }
  0xde   :  { %v139_v24 = vadd.f32 %v138_v22, %v137_v20  ;;  %v147_v25 = vrot.slane %v146_v23, 2  ;;  %v277_v22 = vrot.slane %v901_v11, %v276_v17 }
  0xe0   :  { %v140_v26 = vrot.slane %v139_v24, 1  ;;  %v148_v27 = vadd.f32 %v147_v25, %v146_v23 }
  0xe2   :  { %v141_v28 = vadd.f32 %v140_v26, %v139_v24  ;;  %v149_v29 = vrot.slane %v148_v27, 1  ;;  %v49_v26 = vld [vmem:[#allocation2 + $0x58] sm:$0xff] }
  0xe4   :  { %v142_v30 = vmul.f32 0.125, %v141_v28  ;;  %v150_v31 = vadd.f32 %v149_v29, %v148_v27  ;;  %v48_v27 = vld [vmem:[#allocation2 + $0x50] sm:$0xff]  ;;  %v47_v28 = vld [vmem:[#allocation2 + $0x48] sm:$0xff]  ;;  %v46_v29 = vld [vmem:[#allocation2 + $0x40] sm:$0xff] }
  0xe6   :  { %v151_v32 = vmul.f32 0.125, %v150_v31  ;;  %v152_v33 = vmul.f32 %v142_v30, %v142_v30  ;;  %v156_v40 = vsub.f32 %v906_v14, %v142_v30  ;;  %v282_v30 = vsub.s32 6, %v895_v9 }
  0xe8   :  { %v153_v34 = vsub.f32 %v151_v32, %v152_v33  ;;  %v283_v31 = vrot.slane %v901_v11, %v282_v30 }
  0xea   :  { %v154_v35 = vadd.f32 0.001, %v153_v34 }
  0xec   :  { %780 = vrsqrt.f32 %v154_v35 }
  0xf9   :  { %v781_v38 = vpop.eup %780 }
  0xfa   :  { %v157_v39 = vmul.f32 %v781_v38, %v901_v11 }
  0xfc   :  { %v161_v41 = vrot.slane %v157_v39, %v160_v36 }
  0xfe   :  { %v162_v43 = vmul.f32 %v161_v41, %v156_v40 }
 0x100   :  { %v167_v44 = vadd.f32 %v166_v42, %v162_v43 }
 0x102   :  { %v168_v45 = vmax.f32 %v167_v44, 0.0 }
 0x104   :  { %728 = vmatmul.mubr.msk.f32.vlgmr.msra.gmra.mxu1 %vm134_vm2, %v168_v45 }
 0x105   :  { %749 = vmatprep.mubr.msk.f32.mxu1 %vm836_vm0, %v835_v0  ;;  %742 = vmatpush3.msra.mxu1 %v49_v26 }
 0x106   :  { %743 = vmatprep.subr.mxu1 %v835_v0 }
 0x107   :  { %744 = vmatpush3.msra.mxu1 %v48_v27 }
 0x108   :  { %745 = vmatprep.subr.mxu1 %v835_v0 }
 0x109   :  { %746 = vmatpush3.msra.mxu1 %v47_v28 }
 0x10a   :  { %747 = vmatprep.subr.mxu1 %v835_v0 }
 0x10b   :  { %748 = vmatpush3.msra.mxu1 %v46_v29 }
 0x10c   :  { %763 = vmatprep.subr.mxu1 %v835_v0 }
 0x1c4   :  { %v242_v52 = vpop.f32.mrf.mxu1 }
 0x1c5   :  { %v243_v53 = vadd.f32 %v242_v52, %v172_v51 }
 0x1c6   :  { %v729_v54 = vpop.f32.mrf.mxu1 }
 0x1c7   :  { %v246_v55 = vsel %vm134_vm2, %v243_v53, 0.0  ;;  %v254_v56 = vmul.f32 %v243_v53, %v243_v53 }
 0x1c8   :  { %v247_v57 = vrot.slane %v246_v55, 4 }
 0x1c9   :  { %v255_v58 = vsel %vm134_vm2, %v254_v56, 0.0 }
 0x1ca   :  { %v248_v59 = vadd.f32 %v247_v57, %v246_v55  ;;  %v256_v60 = vrot.slane %v255_v58, 4 }
 0x1cc   :  { %v249_v61 = vrot.slane %v248_v59, 2  ;;  %v257_v62 = vadd.f32 %v256_v60, %v255_v58  ;;  %v383_v58 = vsub.s32 7, %v895_v9  ;;  %v964_v60 = vld [vmem:[%s1019_s3 + $0x8] sm:$0x3f] }
 0x1ce   :  { %v250_v63 = vadd.f32 %v249_v61, %v248_v59  ;;  %v258_v1 = vrot.slane %v257_v62, 2 }
 0x1d0   :  { %v251_v2 = vrot.slane %v250_v63, 1  ;;  %v259_v3 = vadd.f32 %v258_v1, %v257_v62  ;;  %v389_v62 = vrot.slane %v964_v60, %v58_v10  ;;  %v51_v10 = vld [vmem:[#allocation2 + $0x68] sm:$0xff] }
 0x1d2   :  { %v252_v4 = vadd.f32 %v251_v2, %v250_v63  ;;  %v260_v5 = vrot.slane %v259_v3, 1 }
 0x1d4   :  { %v253_v6 = vmul.f32 0.125, %v252_v4  ;;  %v261_v7 = vadd.f32 %v260_v5, %v259_v3  ;;  %v53_v5 = vld [vmem:[#allocation2 + $0x78] sm:$0xff] }
 0x1d6   :  { %v262_v8 = vmul.f32 0.125, %v261_v7  ;;  %v263_v12 = vmul.f32 %v253_v6, %v253_v6  ;;  %v267_v20 = vsub.f32 %v243_v53, %v253_v6  ;;  %v50_v6 = vld [vmem:[#allocation2 + $0x60] sm:$0xff]  ;;  %v584_v7 = vld [vmem:[%s1020_s4 + $0x18] sm:$0xff] }
 0x1d8   :  { %v264_v13 = vsub.f32 %v262_v8, %v263_v12  ;;  %v395_v8 = vrot.slane %v964_v60, %v160_v36 }
 0x1da   :  { %v265_v15 = vadd.f32 0.001, %v264_v13 }
 0x1dc   :  { %782 = vrsqrt.f32 %v265_v15 }
 0x1e9   :  { %v783_v18 = vpop.eup %782 }
 0x1ea   :  { %v268_v19 = vmul.f32 %v783_v18, %v901_v11 }
 0x1ec   :  { %v272_v21 = vrot.slane %v268_v19, %v271_v16 }
 0x1ee   :  { %v273_v23 = vmul.f32 %v272_v21, %v267_v20 }
 0x1f0   :  { %v278_v24 = vadd.f32 %v277_v22, %v273_v23 }
 0x1f2   :  { %v279_v25 = vmax.f32 %v278_v24, 0.0 }
 0x1f4   :  { %739 = vmatmul.mubr.msk.f32.vlgmr.msra.gmra.mxu0 %vm134_vm2, %v279_v25 }
 0x1f5   :  { %760 = vmatprep.mubr.msk.f32.mxu0 %vm836_vm0, %v835_v0  ;;  %753 = vmatpush3.msra.mxu0 %v53_v5 }
 0x1f6   :  { %754 = vmatprep.subr.mxu0 %v835_v0 }
 0x2b4   :  { %v353_v32 = vpop.f32.mrf.mxu0 }
 0x2b5   :  { %v354_v33 = vadd.f32 %v353_v32, %v283_v31 }
 0x2b6   :  { %v740_v34 = vpop.f32.mrf.mxu0 }
 0x2b7   :  { %v953_v35 = vadd.f32 %v354_v33, %v906_v14 }
 0x2b9   :  { %v358_v38 = vsel %vm134_vm2, %v953_v35, 0.0  ;;  %v366_v39 = vmul.f32 %v953_v35, %v953_v35 }
 0x2ba   :  { %v359_v40 = vrot.slane %v358_v38, 4 }
 0x2bb   :  { %v367_v41 = vsel %vm134_vm2, %v366_v39, 0.0 }
 0x2bc   :  { %v360_v42 = vadd.f32 %v359_v40, %v358_v38  ;;  %v368_v43 = vrot.slane %v367_v41, 4 }
 0x2be   :  { %v361_v44 = vrot.slane %v360_v42, 2  ;;  %v369_v45 = vadd.f32 %v368_v43, %v367_v41 }
 0x2c0   :  { %v362_v46 = vadd.f32 %v361_v44, %v360_v42  ;;  %v370_v47 = vrot.slane %v369_v45, 2  ;;  %v500_v42 = vrot.slane %v964_v60, %v171_v50  ;;  %v582_v50 = vld [vmem:[%s1020_s4 + $0x8] sm:$0xff] }
 0x2c2   :  { %v363_v48 = vrot.slane %v362_v46, 1  ;;  %v371_v49 = vadd.f32 %v370_v47, %v369_v45 }
 0x2c4   :  { %v364_v51 = vadd.f32 %v363_v48, %v362_v46  ;;  %v372_v14 = vrot.slane %v371_v49, 1  ;;  %v583_v48 = vld [vmem:[%s1020_s4 + $0x10] sm:$0xff] }
 0x2c6   :  { %v365_v52 = vmul.f32 0.125, %v364_v51  ;;  %v373_v53 = vadd.f32 %v372_v14, %v371_v49  ;;  %v506_v49 = vrot.slane %v964_v60, %v271_v16 }
 0x2c8   :  { %v374_v54 = vmul.f32 0.125, %v373_v53  ;;  %v375_v55 = vmul.f32 %v365_v52, %v365_v52  ;;  %v379_v63 = vsub.f32 %v953_v35, %v365_v52 }
 0x2ca   :  { %v376_v56 = vsub.f32 %v374_v54, %v375_v55 }
 0x2cc   :  { %v377_v57 = vadd.f32 0.001, %v376_v56 }
 0x2ce   :  { %784 = vrsqrt.f32 %v377_v57 }
 0x2db   :  { %v785_v59 = vpop.eup %784 }
 0x2dc   :  { %v380_v61 = vmul.f32 %v785_v59, %v901_v11  ;;  %v52_v11 = vld [vmem:[#allocation2 + $0x70] sm:$0xff] }
 0x2dd   :  { %755 = vmatpush3.msra.mxu0 %v52_v11 }
 0x2de   :  { %v384_v1 = vrot.slane %v380_v61, %v383_v58  ;;  %756 = vmatprep.subr.mxu0 %v835_v0 }
 0x2df   :  { %757 = vmatpush3.msra.mxu0 %v51_v10 }
 0x2e0   :  { %v385_v2 = vmul.f32 %v384_v1, %v379_v63  ;;  %758 = vmatprep.subr.mxu0 %v835_v0 }
 0x2e1   :  { %759 = vmatpush3.msra.mxu0 %v50_v6 }
 0x2e2   :  { %v390_v3 = vadd.f32 %v389_v62, %v385_v2 }
 0x2e4   :  { %v391_v4 = vmax.f32 %v390_v3, 0.0 }
 0x2e6   :  { %750 = vmatmul.mubr.msk.f32.vlgmr.msra.gmra.mxu1 %vm134_vm2, %v391_v4 }
 0x2e7   :  { %771 = vmatprep.mubr.msk.f32.mxu1 %vm836_vm0, %v835_v0  ;;  %764 = vmatpush3.msra.mxu1 %v584_v7 }
 0x2e8   :  { %765 = vmatprep.subr.mxu1 %v835_v0 }
 0x2e9   :  { %766 = vmatpush3.msra.mxu1 %v583_v48 }
 0x2ea   :  { %767 = vmatprep.subr.mxu1 %v835_v0 }
 0x2eb   :  { %768 = vmatpush3.msra.mxu1 %v582_v50 }
 0x2ec   :  { %769 = vmatprep.subr.mxu1 %v835_v0  ;;  %v588_v0 = vrot.slane %v964_v60, %v276_v17 }
 0x3a6   :  { %v465_v12 = vpop.f32.mrf.mxu1 }
 0x3a7   :  { %v466_v13 = vadd.f32 %v465_v12, %v395_v8 }
 0x3a8   :  { %v751_v15 = vpop.f32.mrf.mxu1 }
 0x3a9   :  { %v469_v18 = vsel %vm134_vm2, %v466_v13, 0.0  ;;  %v477_v19 = vmul.f32 %v466_v13, %v466_v13 }
 0x3aa   :  { %v470_v20 = vrot.slane %v469_v18, 4 }
 0x3ab   :  { %v478_v21 = vsel %vm134_vm2, %v477_v19, 0.0 }
 0x3ac   :  { %v471_v22 = vadd.f32 %v470_v20, %v469_v18  ;;  %v479_v23 = vrot.slane %v478_v21, 4 }
 0x3ae   :  { %v472_v24 = vrot.slane %v471_v22, 2  ;;  %v480_v25 = vadd.f32 %v479_v23, %v478_v21 }
 0x3b0   :  { %v473_v26 = vadd.f32 %v472_v24, %v471_v22  ;;  %v481_v27 = vrot.slane %v480_v25, 2 }
 0x3b2   :  { %v474_v28 = vrot.slane %v473_v26, 1  ;;  %v482_v29 = vadd.f32 %v481_v27, %v480_v25 }
 0x3b4   :  { %v475_v30 = vadd.f32 %v474_v28, %v473_v26  ;;  %v483_v31 = vrot.slane %v482_v29, 1 }
 0x3b6   :  { %v476_v36 = vmul.f32 0.125, %v475_v30  ;;  %v484_v32 = vadd.f32 %v483_v31, %v482_v29 }
 0x3b8   :  { %v485_v33 = vmul.f32 0.125, %v484_v32  ;;  %v486_v34 = vmul.f32 %v476_v36, %v476_v36  ;;  %v490_v43 = vsub.f32 %v466_v13, %v476_v36 }
 0x3ba   :  { %v487_v38 = vsub.f32 %v485_v33, %v486_v34 }
 0x3bc   :  { %v488_v39 = vadd.f32 0.001, %v487_v38 }
 0x3be   :  { %786 = vrsqrt.f32 %v488_v39 }
 0x3cb   :  { %v787_v40 = vpop.eup %786 }
 0x3cc   :  { %v491_v41 = vmul.f32 %v787_v40, %v964_v60 }
 0x3ce   :  { %v495_v44 = vrot.slane %v491_v41, %v165_v37  ;;  %v581_v37 = vld [vmem:[%s1020_s4] sm:$0xff]  ;;  %s808_s4 = scalar_lea.vmem %s670_s15, 128 }
 0x3cf   :  { %770 = vmatpush3.msra.mxu1 %v581_v37  ;;  %p809_p5 = scmp.ne.s32.totalorder %s670_s15, %s808_s4  ;;  %p814_p7 = scmp.lt.s32.totalorder %s808_s4, %s808_s4 }
 0x3d0   :  { %v496_v45 = vmul.f32 %v495_v44, %v490_v43 }
 0x3d1   :  { %p815_p8 = por %p814_p7, %p813_p6 }
 0x3d2   :  { %v501_v46 = vadd.f32 %v500_v42, %v496_v45 }
 0x3d3   :  { %p816_p9 = pnand %p815_p8, %p809_p5 }
 0x3d4   :  { %v502_v47 = vmax.f32 %v501_v46, 0.0 }
 0x3d6   :  { %761 = vmatmul.mubr.msk.f32.vlgmr.msra.gmra.mxu0 %vm134_vm2, %v502_v47 }
 0x496   :  { %v576_v51 = vpop.f32.mrf.mxu0 }
 0x497   :  { %v577_v14 = vadd.f32 %v576_v51, %v506_v49 }
 0x498   :  { %v762_v52 = vpop.f32.mrf.mxu0 }
 0x499   :  { %v580_v53 = vadd.f32 %v577_v14, %v953_v35 }
 0x49b   :  { %772 = vmatmul.mubr.msk.f32.vlgmr.msra.gmra.mxu1 %vm134_vm2, %v580_v53 }
 0x55b   :  { %v658_v54 = vpop.f32.mrf.mxu1 }
 0x55c   :  { %v659_v55 = vadd.f32 %v658_v54, %v588_v0 }
 0x55d   :  { %v773_v56 = vpop.f32.mrf.mxu1 }
 0x55e   :  { %662 = vst.msk [vmem:[#allocation5] sm:$0xff] %vm60_vm1, %v659_v55 }
 0x55f   :  { %819 = shalt.err (!%p816_p9)
}
 0x560   :  { %672 = dma.vmem_to_hbm [thread:$0]  %s670_s15, 128, %s1021_s5, [#allocation4]  }
 0x561   :  { %830 = dma.done.wait [#allocation4], 128  }
 0x562   :  { %831 = vsyncadd [#allocation4], 4294967168 }
 0x563   :  { %676 = vsyncpa [#allocation3], 1 }
 0x564   :  { %677 = vsyncpa [#allocation4], 1 }

</bundles_post_ra>
